<compile_context>
chip_gen: v7x
topology: tpu7x:2x2x1
jax: 0.10.0
libtpu: 0.0.40
codegen_flags: <defaults>
</compile_context>

<pallas_src>
import jax
import jax.numpy as jnp
from jax.experimental import pallas as pl
from jax.experimental.pallas import tpu as pltpu


def _round_up(x, m):
    return ((x + m - 1) // m) * m


def dgn_kernel(x_ref, w1_ref, b1_ref, w2_ref, b2_ref, w3_ref, b3_ref, q_ref):
    # One row-tile of the fused 3-layer MLP.  Matmuls run on the MXU with f32
    # accumulation; bias/ReLU epilogues stay f32; MXU operands use the weight
    # dtype (bf16 by default), x is cast in-register (free VPU work).
    x = x_ref[...].astype(w1_ref.dtype)
    h1 = jnp.dot(x, w1_ref[...], preferred_element_type=jnp.float32) + b1_ref[...]
    h1 = jnp.maximum(h1, 0.0).astype(w2_ref.dtype)
    h3 = jnp.dot(h1, w2_ref[...], preferred_element_type=jnp.float32) + b2_ref[...]
    h3 = jnp.maximum(h3, 0.0).astype(w3_ref.dtype)
    q = jnp.dot(h3, w3_ref[...], preferred_element_type=jnp.float32) + b3_ref[...]
    q_ref[...] = q.astype(q_ref.dtype)


def prepare_params(params, compute_dtype=jnp.bfloat16):
    """One-time parameter prep (hoisted out of the hot path).

    Weights are stored [in_features, out_features] (transposed vs. PyTorch) and
    cast to the MXU operand dtype; biases stay f32 (f32 epilogue everywhere).
    """
    w1, b1, w2, b2, w3, b3 = params
    return (
        jnp.asarray(w1, compute_dtype),
        jnp.asarray(b1, jnp.float32).reshape(1, -1),
        jnp.asarray(w2, compute_dtype),
        jnp.asarray(b2, jnp.float32).reshape(1, -1),
        jnp.asarray(w3, compute_dtype),
        jnp.asarray(b3, jnp.float32).reshape(1, -1),
    )


def dgn_forward(x, mask, prepared_params, *, row_tile=512):
    """x: [B, N, num_inputs]; mask: [B, N, mask_dim] (unused, matching PyTorch).

    `prepared_params` must come from prepare_params().  For tiny workloads
    (a few dozen rows) a plain fused-XLA 3-matmul is competitive; this kernel
    targets the bandwidth-limited regime where rows is large.
    """
    del mask  # unused by DGN.forward (the att layers are never called)
    w1, b1, w2, b2, w3, b3 = prepared_params
    B, N, D_in = x.shape
    H, H2, A = w1.shape[1], w2.shape[1], w3.shape[1]

    rows = B * N
    # Row tile: big (amortizes ~0.35 us/grid-step), multiple of 8 (sublane).
    rt = max(_round_up(min(row_tile, _round_up(rows, 8)), 8), 8)
    # v7x megacore: make sure there are >=2 grid steps when there's enough
    # work to split across the two TensorCores.
    if rows >= 256 and _round_up(rows, rt) // rt < 2:
        rt = _round_up((rows + 1) // 2, 8)
    rows_p = _round_up(rows, rt)
    grid = (rows_p // rt,)

    x2d = x.reshape(rows, D_in)
    if rows_p != rows:
        # Padded (zero) rows still pick up bias + ReLU, so the padded rows of
        # the kernel output contain garbage; they are sliced off below.  Do
        # not reduce over the raw kernel output before that slice.
        x2d = jnp.pad(x2d, ((0, rows_p - rows), (0, 0)))

    # Grid-invariant weights/biases: whole-array resident in VMEM (single
    # copy, no per-step DMA, no double-buffer reservation).
    resident = pl.BlockSpec(memory_space=pltpu.MemorySpace.VMEM)

    # Explicit VMEM accounting (lane-padded to 128 because that's how vregs /
    # VMEM tiles are laid out), then clamp well under v7x's 64 MiB.
    lane = 128
    w_item = jnp.dtype(w1.dtype).itemsize
    x_item = jnp.dtype(x.dtype).itemsize
    Dl, Hl, H2l, Al = (_round_up(d, lane) for d in (D_in, H, H2, A))
    vmem_bytes = (
        2 * rt * Dl * x_item                      # double-buffered x tiles
        + 2 * rt * Al * 4                         # double-buffered out tiles
        + rt * Hl * (4 + w_item)                  # live h1 f32 + cast copy
        + rt * H2l * (4 + w_item)                 # live h3 f32 + cast copy
        + rt * Al * 4                             # q f32 before store cast
        + (D_in * Hl + H * H2l + H2 * Al) * w_item  # resident weights
        + (Hl + H2l + Al) * 4                     # resident biases
    )
    vmem_limit = int(min(max(int(1.5 * vmem_bytes) + (4 << 20), 8 << 20), 48 << 20))

    q2d = pl.pallas_call(
        dgn_kernel,
        out_shape=jax.ShapeDtypeStruct((rows_p, A), jnp.float32),
        grid_spec=pltpu.PrefetchScalarGridSpec(
            num_scalar_prefetch=0,
            grid=grid,
            in_specs=[
                pl.BlockSpec((rt, D_in), lambda i: (i, 0)),  # x row tile, unpadded K
                resident,  # W1
                resident,  # b1
                resident,  # W2
                resident,  # b2
                resident,  # W3
                resident,  # b3
            ],
            out_specs=pl.BlockSpec((rt, A), lambda i: (i, 0)),  # unpadded output
        ),
        compiler_params=pltpu.CompilerParams(
            dimension_semantics=("parallel",),  # rows shard across v7x's 2 TCs
            vmem_limit_bytes=vmem_limit,
        ),
    )(x2d, w1, b1, w2, b2, w3, b3)

    q1 = q2d[:rows].reshape(B, N, A)
    return q1, q1


def init_params(key, num_inputs, hidden_dim, num_actions):
    """Deterministic synthetic parameters (PyTorch-Linear-like uniform init)."""
    H2 = hidden_dim // 2
    ks = jax.random.split(key, 6)

    def lin(kw, kb, fan_in, fan_out):
        bound = 1.0 / (fan_in ** 0.5)
        w = jax.random.uniform(kw, (fan_in, fan_out), jnp.float32, -bound, bound)
        b = jax.random.uniform(kb, (1, fan_out), jnp.float32, -bound, bound)
        return w, b

    w1, b1 = lin(ks[0], ks[1], num_inputs, hidden_dim)   # encoder.fc
    w2, b2 = lin(ks[2], ks[3], hidden_dim, H2)           # DGN.linear
    w3, b3 = lin(ks[4], ks[5], H2, num_actions)          # q_net1.fc
    return (w1, b1, w2, b2, w3, b3)


if __name__ == "__main__":
    # Small shapes consistent with DGN(n_agent, num_inputs, hidden_dim,
    # num_actions, mask_dim).
    batch, n_agent = 2, 8
    num_inputs, hidden_dim, num_actions, mask_dim = 32, 32, 4, 8

    key = jax.random.PRNGKey(0)
    kx, km, kp = jax.random.split(key, 3)

    x = jax.random.normal(kx, (batch, n_agent, num_inputs), jnp.float32)
    mask = (jax.random.uniform(km, (batch, n_agent, mask_dim)) > 0.5).astype(jnp.float32)

    params = init_params(kp, num_inputs, hidden_dim, num_actions)

    # Pure-JAX reference of the same math.
    w1, b1, w2, b2, w3, b3 = params
    h1 = jnp.maximum(x.reshape(-1, num_inputs) @ w1 + b1, 0.0)
    h3 = jnp.maximum(h1 @ w2 + b2, 0.0)
    q_ref = (h3 @ w3 + b3).reshape(batch, n_agent, num_actions)

    fwd = jax.jit(dgn_forward)

    # f32 operand path: exact check.
    p_f32 = prepare_params(params, compute_dtype=jnp.float32)
    q1, q1_dup = fwd(x, mask, p_f32)
    jax.block_until_ready(q1)
    assert q1.shape == (batch, n_agent, num_actions)
    assert jnp.allclose(q1, q_ref, atol=1e-5, rtol=1e-5)
    assert jnp.array_equal(q1, q1_dup)

    # Default bf16 MXU-operand path (f32 accumulation/epilogue): looser check.
    p_bf16 = prepare_params(params)
    q1_bf16, _ = fwd(x, mask, p_bf16)
    jax.block_until_ready(q1_bf16)
    assert jnp.allclose(q1_bf16, q_ref, atol=1e-1, rtol=1e-1)

    print("KERNEL_OK")
</pallas_src>

<mosaic_0001>
module attributes {stable_mosaic.version = 11 : i64} {
  func.func @dgn_kernel(%arg0: i32, %arg1: memref<16x32xf32, #tpu.memory_space<vmem>>, %arg2: memref<32x32xf32, #tpu.memory_space<vmem>>, %arg3: memref<1x32xf32, #tpu.memory_space<vmem>>, %arg4: memref<32x16xf32, #tpu.memory_space<vmem>>, %arg5: memref<1x16xf32, #tpu.memory_space<vmem>>, %arg6: memref<16x4xf32, #tpu.memory_space<vmem>>, %arg7: memref<1x4xf32, #tpu.memory_space<vmem>>, %arg8: memref<16x4xf32, #tpu.memory_space<vmem>>) attributes {dimension_semantics = [#tpu.dimension_semantics<parallel>], iteration_bounds = array<i64: 1>, scalar_prefetch = 0 : i64, scratch_operands = 0 : i64, tpu.core_type = #tpu.core_type<tc>, window_params = [{transform_indices = @transform_0, window_bounds = array<i64: 16, 32>}, {pipeline_mode = #tpu.pipeline_mode<synchronous>, transform_indices = @transform_1, window_bounds = array<i64: 32, 32>}, {pipeline_mode = #tpu.pipeline_mode<synchronous>, transform_indices = @transform_2, window_bounds = array<i64: 1, 32>}, {pipeline_mode = #tpu.pipeline_mode<synchronous>, transform_indices = @transform_3, window_bounds = array<i64: 32, 16>}, {pipeline_mode = #tpu.pipeline_mode<synchronous>, transform_indices = @transform_4, window_bounds = array<i64: 1, 16>}, {pipeline_mode = #tpu.pipeline_mode<synchronous>, transform_indices = @transform_5, window_bounds = array<i64: 16, 4>}, {pipeline_mode = #tpu.pipeline_mode<synchronous>, transform_indices = @transform_6, window_bounds = array<i64: 1, 4>}, {transform_indices = @transform_7, window_bounds = array<i64: 16, 4>}]} {
    %c0 = arith.constant 0 : index
    %c0_0 = arith.constant 0 : index
    %0 = vector.load %arg1[%c0, %c0_0] : memref<16x32xf32, #tpu.memory_space<vmem>>, vector<16x32xf32>
    %c0_1 = arith.constant 0 : index
    %c0_2 = arith.constant 0 : index
    %1 = vector.load %arg2[%c0_1, %c0_2] : memref<32x32xf32, #tpu.memory_space<vmem>>, vector<32x32xf32>
    %cst = arith.constant dense<0.000000e+00> : vector<16x32xf32>
    %2 = tpu.matmul %0, %1, %cst {dimension_numbers = #tpu.dot_dimension_numbers<[1], [0], [0], [1], [0, 0, 1, 1], [], []>} : vector<16x32xf32>, vector<32x32xf32>, vector<16x32xf32> -> vector<16x32xf32>
    %c0_3 = arith.constant 0 : index
    %c0_4 = arith.constant 0 : index
    %3 = vector.load %arg3[%c0_3, %c0_4] : memref<1x32xf32, #tpu.memory_space<vmem>>, vector<1x32xf32>
    %4 = vector.broadcast %3 : vector<1x32xf32> to vector<16x32xf32>
    %5 = arith.addf %2, %4 : vector<16x32xf32>
    %cst_5 = arith.constant 0.000000e+00 : f32
    %6 = vector.broadcast %cst_5 : f32 to vector<16x32xf32>
    %7 = arith.maximumf %5, %6 : vector<16x32xf32>
    %c0_6 = arith.constant 0 : index
    %c0_7 = arith.constant 0 : index
    %8 = vector.load %arg4[%c0_6, %c0_7] : memref<32x16xf32, #tpu.memory_space<vmem>>, vector<32x16xf32>
    %cst_8 = arith.constant dense<0.000000e+00> : vector<16x16xf32>
    %9 = tpu.matmul %7, %8, %cst_8 {dimension_numbers = #tpu.dot_dimension_numbers<[1], [0], [0], [1], [0, 0, 1, 1], [], []>} : vector<16x32xf32>, vector<32x16xf32>, vector<16x16xf32> -> vector<16x16xf32>
    %c0_9 = arith.constant 0 : index
    %c0_10 = arith.constant 0 : index
    %10 = vector.load %arg5[%c0_9, %c0_10] : memref<1x16xf32, #tpu.memory_space<vmem>>, vector<1x16xf32>
    %11 = vector.broadcast %10 : vector<1x16xf32> to vector<16x16xf32>
    %12 = arith.addf %9, %11 : vector<16x16xf32>
    %cst_11 = arith.constant 0.000000e+00 : f32
    %13 = vector.broadcast %cst_11 : f32 to vector<16x16xf32>
    %14 = arith.maximumf %12, %13 : vector<16x16xf32>
    %c0_12 = arith.constant 0 : index
    %c0_13 = arith.constant 0 : index
    %15 = vector.load %arg6[%c0_12, %c0_13] : memref<16x4xf32, #tpu.memory_space<vmem>>, vector<16x4xf32>
    %cst_14 = arith.constant dense<0.000000e+00> : vector<16x4xf32>
    %16 = tpu.matmul %14, %15, %cst_14 {dimension_numbers = #tpu.dot_dimension_numbers<[1], [0], [0], [1], [0, 0, 1, 1], [], []>} : vector<16x16xf32>, vector<16x4xf32>, vector<16x4xf32> -> vector<16x4xf32>
    %c0_15 = arith.constant 0 : index
    %c0_16 = arith.constant 0 : index
    %17 = vector.load %arg7[%c0_15, %c0_16] : memref<1x4xf32, #tpu.memory_space<vmem>>, vector<1x4xf32>
    %18 = vector.broadcast %17 : vector<1x4xf32> to vector<16x4xf32>
    %19 = arith.addf %16, %18 : vector<16x4xf32>
    %c0_17 = arith.constant 0 : index
    %c0_18 = arith.constant 0 : index
    %20 = vector.load %arg8[%c0_17, %c0_18] : memref<16x4xf32, #tpu.memory_space<vmem>>, vector<16x4xf32>
    tpu.vector_store %arg8[%c0_17, %c0_18], %19 {strides = array<i32>} : memref<16x4xf32, #tpu.memory_space<vmem>>, vector<16x4xf32>,
    return
  }
  func.func @transform_0(%arg0: i32) -> (i32, i32) {
    %c0_i32 = arith.constant 0 : i32
    %c0_i32_0 = arith.constant 0 : i32
    return %arg0, %c0_i32 : i32, i32
  }
  func.func @transform_1(%arg0: i32) -> (i32, i32) {
    %c0_i32 = arith.constant 0 : i32
    %c0_i32_0 = arith.constant 0 : i32
    %c0_i32_1 = arith.constant 0 : i32
    return %c0_i32, %c0_i32_0 : i32, i32
  }
  func.func @transform_2(%arg0: i32) -> (i32, i32) {
    %c0_i32 = arith.constant 0 : i32
    %c0_i32_0 = arith.constant 0 : i32
    %c0_i32_1 = arith.constant 0 : i32
    return %c0_i32, %c0_i32_0 : i32, i32
  }
  func.func @transform_3(%arg0: i32) -> (i32, i32) {
    %c0_i32 = arith.constant 0 : i32
    %c0_i32_0 = arith.constant 0 : i32
    %c0_i32_1 = arith.constant 0 : i32
    return %c0_i32, %c0_i32_0 : i32, i32
  }
  func.func @transform_4(%arg0: i32) -> (i32, i32) {
    %c0_i32 = arith.constant 0 : i32
    %c0_i32_0 = arith.constant 0 : i32
    %c0_i32_1 = arith.constant 0 : i32
    return %c0_i32, %c0_i32_0 : i32, i32
  }
  func.func @transform_5(%arg0: i32) -> (i32, i32) {
    %c0_i32 = arith.constant 0 : i32
    %c0_i32_0 = arith.constant 0 : i32
    %c0_i32_1 = arith.constant 0 : i32
    return %c0_i32, %c0_i32_0 : i32, i32
  }
  func.func @transform_6(%arg0: i32) -> (i32, i32) {
    %c0_i32 = arith.constant 0 : i32
    %c0_i32_0 = arith.constant 0 : i32
    %c0_i32_1 = arith.constant 0 : i32
    return %c0_i32, %c0_i32_0 : i32, i32
  }
  func.func @transform_7(%arg0: i32) -> (i32, i32) {
    %c0_i32 = arith.constant 0 : i32
    %c0_i32_0 = arith.constant 0 : i32
    return %arg0, %c0_i32 : i32, i32
  }
}

</mosaic_0001>

<bundles_post_ra>
// kernel: dgn_forward.1
= control target key start
LH: loop header
LB: loop body
LE: loop exit
PB: predicated region body
PF: predicated region fallthrough
CT: control target
= control target key end

     0   :  { %vm39_vm0 = vcmask 261120   ;;  %vm226_vm1 = vcmask 130048   ;;  %vm308_vm2 = vcmask 31744   ;;  %s484_s1 = inlined_call_operand.vmem [shape: f32[32,32], index: 1, kind: input, shape index: {}]   ;;  %s485_s0 = inlined_call_operand.vmem [shape: f32[16,32], index: 0, kind: input, shape index: {}]   ;;  %s486_s3 = inlined_call_operand.vmem [shape: f32[32,16], index: 3, kind: input, shape index: {}]   ;;  %s487_s2 = inlined_call_operand.vmem [shape: f32[1,32], index: 2, kind: input, shape index: {}]   ;;  %s488_s5 = inlined_call_operand.vmem [shape: f32[16,4], index: 5, kind: input, shape index: {}]   ;;  %s489_s4 = inlined_call_operand.vmem [shape: f32[1,16], index: 4, kind: input, shape index: {}]   ;;  %s490_s6 = inlined_call_operand.vmem [shape: f32[1,4], index: 6, kind: input, shape index: {}]   ;;  %s491_s7 = inlined_call_operand.vmem [shape: f32[16,4], index: 7, kind: output, shape index: {}]  }
   0x1   :  { %v28_v0 = vld [vmem:[%s484_s1] sm:$0xff]  ;;  %v29_v1 = vld [vmem:[%s484_s1 + $0x8] sm:$0xff]  ;;  %v30_v2 = vld [vmem:[%s484_s1 + $0x10] sm:$0xff] }
   0x2   :  { %v369_v3 = vpack.c.bf16 %v29_v1, %v28_v0  ;;  %v31_v4 = vld [vmem:[%s484_s1 + $0x18] sm:$0xff]  ;;  %v26_v5 = vld [vmem:[%s485_s0] sm:$0xff]  ;;  %v124_v8 = vld [vmem:[%s486_s3 + $0x8] sm:$0xff] }
   0x3   :  { %v373_v6 = vpack.c.bf16 %v31_v4, %v30_v2  ;;  %348 = vmatprep.mubr.msk.f32.mxu0 %vm39_vm0, %v26_v5  ;;  %v123_v7 = vld [vmem:[%s486_s3] sm:$0xff]  ;;  %v27_v10 = vld [vmem:[%s485_s0 + $0x8] sm:$0xff]  ;;  %v125_v11 = vld [vmem:[%s486_s3 + $0x10] sm:$0xff] }
   0x4   :  { %370 = vmatprep.subr.bf16.mxu0 %v369_v3  ;;  %v377_v9 = vpack.c.bf16 %v124_v8, %v123_v7  ;;  %v126_v12 = vld [vmem:[%s486_s3 + $0x18] sm:$0xff]  ;;  %v315_v14 = vld [vmem:[%s487_s2] ss:$0 sm:$0xff]  ;;  %v218_v22 = vld [vmem:[%s488_s5 + $0x8] sm:$0xff] }
   0x5   :  { %372 = vmatpush3.bf16.msra.mxu0 %v369_v3  ;;  %v381_v13 = vpack.c.bf16 %v126_v12, %v125_v11  ;;  %v217_v21 = vld [vmem:[%s488_s5] sm:$0xff] }
   0x6   :  { %374 = vmatprep.subr.bf16.mxu0 %v373_v6  ;;  %378 = vmatprep.subr.bf16.mxu1 %v377_v9  ;;  %v385_v23 = vpack.c.bf16 %v218_v22, %v217_v21  ;;  %v318_v24 = vld [vmem:[%s489_s4] ss:$0 sm:$0xff] }
   0x7   :  { %380 = vmatpush3.bf16.msra.mxu1 %v377_v9  ;;  %v321_v31 = vld [vmem:[%s490_s6] ss:$0 sm:$0xff] }
   0x8   :  { %382 = vmatprep.subr.bf16.mxu1 %v381_v13 }
   0x9   :  { %376 = vmatpush3.bf16.msra.mxu0 %v373_v6 }
   0xa   :  { %386 = vmatprep.subr.bf16.mxu0 %v385_v23 }
   0xb   :  { %384 = vmatpush3.bf16.msra.mxu1 %v381_v13 }
   0xc   :  { %349 = vmatmul.mubr.msk.f32.vlgmr.msra.gmra.mrb[0].mxu0 %vm39_vm0, %v27_v10 }
   0xd   :  { %388 = vmatpush3.bf16.msra.mxu0 %v385_v23 }
  0xdf   :  { %v350_v15 = vpop.f32.mrb[0].mxu0 }
  0xe0   :  { %v118_v16 = vadd.f32 %v350_v15, %v315_v14  ;;  %v112_v17 = vpop.f32.mrb[1].mxu0 }
  0xe1   :  { %v113_v18 = vadd.f32 %v315_v14, %v112_v17 }
  0xe2   :  { %v122_v20 = vmax.f32 %v118_v16, 0.0 }
  0xe3   :  { %v121_v19 = vmax.f32 %v113_v18, 0.0 }
  0xe5   :  { %359 = vmatprep.mubr.msk.f32.mxu1 %vm39_vm0, %v121_v19 }
  0xe6   :  { %360 = vmatmul.mubr.msk.f32.vlgmr.msra.gmra.mrb[0].mxu1 %vm39_vm0, %v122_v20 }
 0x1b9   :  { %v361_v25 = vpop.f32.mrb[0].mxu1 }
 0x1ba   :  { %v212_v26 = vadd.f32 %v361_v25, %v318_v24  ;;  %v206_v27 = vpop.f32.mrb[1].mxu1 }
 0x1bb   :  { %v207_v28 = vadd.f32 %v318_v24, %v206_v27 }
 0x1bc   :  { %v216_v30 = vmax.f32 %v212_v26, 0.0 }
 0x1bd   :  { %v215_v29 = vmax.f32 %v207_v28, 0.0 }
 0x1bf   :  { %366 = vmatprep.mubr.msk.f32.mxu0 %vm226_vm1, %v215_v29 }
 0x1c0   :  { %367 = vmatmul.mubr.msk.f32.vlgmr.msra.gmra.mrb[2].mxu0 %vm226_vm1, %v216_v30 }
 0x293   :  { %v368_v32 = vpop.f32.mrb[2].mxu0 }
 0x294   :  { %v305_v33 = vadd.f32 %v368_v32, %v321_v31  ;;  %v299_v34 = vpop.f32.mrb[3].mxu0 }
 0x295   :  { %v300_v35 = vadd.f32 %v321_v31, %v299_v34 }
 0x296   :  { %310 = vst.msk [vmem:[%s491_s7 + $0x8] sm:$0xff] %vm308_vm2, %v305_v33 }
 0x297   :  { %309 = vst.msk [vmem:[%s491_s7] sm:$0xff] %vm308_vm2, %v300_v35 }

</bundles_post_ra>
